<compile_context>
chip_gen: v6e
topology: v6e:2x2x1
jax: 0.10.0
libtpu: 0.0.40
codegen_flags: <defaults>
</compile_context>

<pallas_src>
import functools
import math

import jax
import jax.numpy as jnp
from jax.experimental import pallas as pl
from jax.experimental.pallas import tpu as pltpu


# --------------------------------------------------------------------------- #
# Fused kernel: attention + trans_conv + BatchNorm + ReLU + residual.          #
# --------------------------------------------------------------------------- #
def _sa_fused_kernel(x_ref, wmv_ref, wt_ref, aux_ref, o_ref, *, batch, n, eps):
    """Fused SA forward over one lane-dense (C, B*N) slab.

    x_ref   : (C, B*N) f32  input; batch b occupies columns [b*N, (b+1)*N)
    wmv_ref : (2C, C)  f32  rows 0:C  -> M = Wqk^T Wqk / sqrt(da)
                            rows C:2C -> Wv
    wt_ref  : (C, C)   f32  trans_conv weight
    aux_ref : (C, 4)   f32  columns: [b_v, b_t, bn_gamma, bn_beta]
    o_ref   : (C, B*N) f32  x + relu(BN(trans_conv(x_s)))
    """
    c = wt_ref.shape[0]
    xs = x_ref[...]                                   # (C, B*N)

    bv = aux_ref[:, 0:1]                              # (C, 1)
    bt = aux_ref[:, 1:2]
    gamma = aux_ref[:, 2:3]
    beta = aux_ref[:, 3:4]

    # Both x-side 1x1 convs as a single MXU pass over the full column slab.
    mv = jnp.dot(wmv_ref[...], xs, preferred_element_type=jnp.float32)   # (2C, B*N)
    mx = mv[:c, :]                                    # M @ x (energy precursor)
    v = mv[c:, :] + bv                                # v_conv(x)

    # Per-batch attention; statically unrolled so only one (N, N) tile is live.
    att_out = []
    for b in range(batch):
        lo, hi = b * n, (b + 1) * n
        mxb = mx[:, lo:hi]                            # (C, N)
        xb = xs[:, lo:hi]                             # (C, N)
        vb = v[:, lo:hi]                              # (C, N)
        # energy[i, j] = x[:, i]^T M x[:, j] == (q[:, i] . k[:, j]) / sqrt(da)
        energy = jax.lax.dot_general(
            mxb, xb, (((0,), (0,)), ((), ())),
            preferred_element_type=jnp.float32)       # (N, N)
        e_max = jnp.max(energy, axis=-1, keepdims=True)
        p = jnp.exp(energy - e_max)
        denom = jnp.sum(p, axis=-1, keepdims=True)
        att = p * pl.reciprocal(denom, approx=False)  # exact f32 softmax
        # x_s[c, j] = sum_i v[c, i] * att[i, j]   (== torch.bmm(x_v, attention))
        att_out.append(jnp.dot(vb, att, preferred_element_type=jnp.float32))
    x_s = jnp.concatenate(att_out, axis=1) if batch > 1 else att_out[0]   # (C, B*N)

    # trans_conv over the full slab (single MXU pass).
    t = jnp.dot(wt_ref[...], x_s, preferred_element_type=jnp.float32) + bt

    # BatchNorm1d training-mode statistics over all B*N columns per channel,
    # centered variance, fused with affine + ReLU + residual add.
    inv_cnt = 1.0 / float(batch * n)
    mean = jnp.sum(t, axis=1, keepdims=True) * inv_cnt          # (C, 1)
    tc = t - mean
    var = jnp.sum(tc * tc, axis=1, keepdims=True) * inv_cnt     # biased variance
    scale = gamma * jax.lax.rsqrt(var + eps)
    y = jnp.maximum(scale * tc + beta, 0.0)
    o_ref[...] = (xs + y).astype(o_ref.dtype)


# --------------------------------------------------------------------------- #
# Wrapper                                                                      #
# --------------------------------------------------------------------------- #
def prepare_params(params):
    """One-time weight preprocessing, hoisted out of the per-call path."""
    w_qk = params['w_qk'].astype(jnp.float32)                    # (da, C)
    c = w_qk.shape[1]
    da = c // 4
    m = jnp.dot(w_qk.T, w_qk) / math.sqrt(da)                    # (C, C), symmetric
    w_stack = jnp.concatenate([m, params['w_v'].astype(jnp.float32)], axis=0)  # (2C, C)
    aux = jnp.stack([params['b_v'], params['b_t'],
                     params['bn_gamma'], params['bn_beta']], axis=1).astype(jnp.float32)
    return {'w_stack': w_stack,
            'w_t': params['w_t'].astype(jnp.float32),
            'aux': aux}


@jax.jit
def sa_forward(x, prep):
    """x: [B, C, N] float32.  prep: output of prepare_params(params)."""
    B, C, N = x.shape
    # Present the 1x1 convs with a lane-dense (C, B*N) column slab.
    x_slab = jnp.transpose(x, (1, 0, 2)).reshape(C, B * N)

    kernel = functools.partial(_sa_fused_kernel, batch=B, n=N, eps=1e-5)
    out_slab = pl.pallas_call(
        kernel,
        out_shape=jax.ShapeDtypeStruct((C, B * N), x.dtype),
        grid_spec=pltpu.PrefetchScalarGridSpec(
            num_scalar_prefetch=0,
            grid=(1,),
            in_specs=[
                pl.BlockSpec((C, B * N), lambda i: (0, 0)),
                pl.BlockSpec((2 * C, C), lambda i: (0, 0)),
                pl.BlockSpec((C, C), lambda i: (0, 0)),
                pl.BlockSpec((C, 4), lambda i: (0, 0)),
            ],
            out_specs=pl.BlockSpec((C, B * N), lambda i: (0, 0)),
        ),
        compiler_params=pltpu.CompilerParams(
            dimension_semantics=("arbitrary",),
        ),
    )(x_slab, prep['w_stack'], prep['w_t'], prep['aux'])

    return jnp.transpose(out_slab.reshape(C, B, N), (1, 0, 2))


# --------------------------------------------------------------------------- #
# Pure-JAX reference (exact f32), mirroring the PyTorch forward (training BN). #
# --------------------------------------------------------------------------- #
def sa_reference(x, params, *, eps=1e-5):
    da = x.shape[1] // 4
    q = jnp.einsum('dc,bcn->bdn', params['w_qk'], x)
    v = jnp.einsum('oc,bcn->bon', params['w_v'], x) + params['b_v'][None, :, None]
    energy = jnp.einsum('bdn,bdm->bnm', q, q) / math.sqrt(da)
    att = jax.nn.softmax(energy, axis=-1)
    x_s = jnp.einsum('bcn,bnm->bcm', v, att)
    t = jnp.einsum('oc,bcn->bon', params['w_t'], x_s) + params['b_t'][None, :, None]
    mean = jnp.mean(t, axis=(0, 2), keepdims=True)
    var = jnp.mean((t - mean) ** 2, axis=(0, 2), keepdims=True)
    t_hat = (t - mean) * jax.lax.rsqrt(var + eps)
    y = params['bn_gamma'][None, :, None] * t_hat + params['bn_beta'][None, :, None]
    return x + jnp.maximum(y, 0.0)


def init_params(key, channels):
    da = channels // 4
    ks = jax.random.split(key, 5)
    scale = 1.0 / math.sqrt(channels)
    return {
        'w_qk': jax.random.uniform(ks[0], (da, channels), jnp.float32, -scale, scale),
        'w_v': jax.random.uniform(ks[1], (channels, channels), jnp.float32, -scale, scale),
        'b_v': jax.random.uniform(ks[2], (channels,), jnp.float32, -scale, scale),
        'w_t': jax.random.uniform(ks[3], (channels, channels), jnp.float32, -scale, scale),
        'b_t': jax.random.uniform(ks[4], (channels,), jnp.float32, -scale, scale),
        'bn_gamma': jnp.ones((channels,), jnp.float32),
        'bn_beta': jnp.zeros((channels,), jnp.float32),
    }


if __name__ == "__main__":
    # Small, lane-dense demo shape: B=2, C=16 channels, N=128 points.
    B, C, N = 2, 16, 128
    key = jax.random.PRNGKey(0)
    kx, kp = jax.random.split(key)
    x = jax.random.normal(kx, (B, C, N), jnp.float32)
    params = init_params(kp, C)

    prep = prepare_params(params)          # one-time weight preprocessing
    out = jax.block_until_ready(sa_forward(x, prep))
    ref = sa_reference(x, params)

    assert out.shape == (B, C, N)
    max_err = float(jnp.max(jnp.abs(out - ref)))
    assert jnp.allclose(out, ref, rtol=1e-2, atol=1e-2), (
        f"mismatch vs reference, max|err|={max_err}")
    print("KERNEL_OK")
</pallas_src>

<mosaic_0001>
module attributes {stable_mosaic.version = 11 : i64} {
  func.func @_sa_fused_kernel(%arg0: i32, %arg1: memref<16x256xf32, #tpu.memory_space<vmem>>, %arg2: memref<32x16xf32, #tpu.memory_space<vmem>>, %arg3: memref<16x16xf32, #tpu.memory_space<vmem>>, %arg4: memref<16x4xf32, #tpu.memory_space<vmem>>, %arg5: memref<16x256xf32, #tpu.memory_space<vmem>>) attributes {dimension_semantics = [#tpu.dimension_semantics<arbitrary>], iteration_bounds = array<i64: 1>, scalar_prefetch = 0 : i64, scratch_operands = 0 : i64, tpu.core_type = #tpu.core_type<tc>, window_params = [{pipeline_mode = #tpu.pipeline_mode<synchronous>, transform_indices = @transform_0, window_bounds = array<i64: 16, 256>}, {pipeline_mode = #tpu.pipeline_mode<synchronous>, transform_indices = @transform_1, window_bounds = array<i64: 32, 16>}, {pipeline_mode = #tpu.pipeline_mode<synchronous>, transform_indices = @transform_2, window_bounds = array<i64: 16, 16>}, {pipeline_mode = #tpu.pipeline_mode<synchronous>, transform_indices = @transform_3, window_bounds = array<i64: 16, 4>}, {pipeline_mode = #tpu.pipeline_mode<synchronous>, transform_indices = @transform_4, window_bounds = array<i64: 16, 256>}]} {
    %c0 = arith.constant 0 : index
    %c0_0 = arith.constant 0 : index
    %0 = vector.load %arg1[%c0, %c0_0] : memref<16x256xf32, #tpu.memory_space<vmem>>, vector<16x256xf32>
    %c0_1 = arith.constant 0 : index
    %c0_2 = arith.constant 0 : index
    %1 = vector.load %arg4[%c0_1, %c0_2] : memref<16x4xf32, #tpu.memory_space<vmem>>, vector<16x1xf32>
    %c0_3 = arith.constant 0 : index
    %c1 = arith.constant 1 : index
    %2 = vector.load %arg4[%c0_3, %c1] : memref<16x4xf32, #tpu.memory_space<vmem>>, vector<16x1xf32>
    %c0_4 = arith.constant 0 : index
    %c2 = arith.constant 2 : index
    %3 = vector.load %arg4[%c0_4, %c2] : memref<16x4xf32, #tpu.memory_space<vmem>>, vector<16x1xf32>
    %c0_5 = arith.constant 0 : index
    %c3 = arith.constant 3 : index
    %4 = vector.load %arg4[%c0_5, %c3] : memref<16x4xf32, #tpu.memory_space<vmem>>, vector<16x1xf32>
    %c0_6 = arith.constant 0 : index
    %c0_7 = arith.constant 0 : index
    %5 = vector.load %arg2[%c0_6, %c0_7] : memref<32x16xf32, #tpu.memory_space<vmem>>, vector<32x16xf32>
    %cst = arith.constant dense<0.000000e+00> : vector<32x256xf32>
    %6 = tpu.matmul %5, %0, %cst {dimension_numbers = #tpu.dot_dimension_numbers<[1], [0], [0], [1], [0, 0, 1, 1], [], []>} : vector<32x16xf32>, vector<16x256xf32>, vector<32x256xf32> -> vector<32x256xf32>
    %7 = vector.extract_strided_slice %6 {offsets = [0, 0], sizes = [16, 256], strides = [1, 1]} : vector<32x256xf32> to vector<16x256xf32>
    %8 = vector.extract_strided_slice %6 {offsets = [16, 0], sizes = [16, 256], strides = [1, 1]} : vector<32x256xf32> to vector<16x256xf32>
    %9 = vector.broadcast %1 : vector<16x1xf32> to vector<16x256xf32>
    %10 = arith.addf %8, %9 : vector<16x256xf32>
    %11 = vector.extract_strided_slice %7 {offsets = [0, 0], sizes = [16, 128], strides = [1, 1]} : vector<16x256xf32> to vector<16x128xf32>
    %12 = vector.extract_strided_slice %0 {offsets = [0, 0], sizes = [16, 128], strides = [1, 1]} : vector<16x256xf32> to vector<16x128xf32>
    %13 = vector.extract_strided_slice %10 {offsets = [0, 0], sizes = [16, 128], strides = [1, 1]} : vector<16x256xf32> to vector<16x128xf32>
    %cst_8 = arith.constant dense<0.000000e+00> : vector<128x128xf32>
    %14 = tpu.matmul %11, %12, %cst_8 {dimension_numbers = #tpu.dot_dimension_numbers<[0], [0], [1], [1], [0, 1, 1, 1], [], []>} : vector<16x128xf32>, vector<16x128xf32>, vector<128x128xf32> -> vector<128x128xf32>
    %cst_9 = arith.constant dense<0xFF800000> : vector<128xf32>
    %15 = vector.multi_reduction <maximumf>, %14, %cst_9 [1] : vector<128x128xf32> to vector<128xf32>
    %16 = vector.shape_cast %15 : vector<128xf32> to vector<128x1xf32>
    %17 = vector.broadcast %16 : vector<128x1xf32> to vector<128x128xf32>
    %18 = arith.subf %14, %17 : vector<128x128xf32>
    %19 = math.exp %18 : vector<128x128xf32>
    %cst_10 = arith.constant dense<0.000000e+00> : vector<128xf32>
    %20 = vector.multi_reduction <add>, %19, %cst_10 [1] : vector<128x128xf32> to vector<128xf32>
    %21 = vector.shape_cast %20 : vector<128xf32> to vector<128x1xf32>
    %22 = tpu.reciprocal %21 : vector<128x1xf32> -> vector<128x1xf32>
    %23 = vector.broadcast %22 : vector<128x1xf32> to vector<128x128xf32>
    %24 = arith.mulf %19, %23 : vector<128x128xf32>
    %cst_11 = arith.constant dense<0.000000e+00> : vector<16x128xf32>
    %25 = tpu.matmul %13, %24, %cst_11 {dimension_numbers = #tpu.dot_dimension_numbers<[1], [0], [0], [1], [0, 0, 1, 1], [], []>} : vector<16x128xf32>, vector<128x128xf32>, vector<16x128xf32> -> vector<16x128xf32>
    %26 = vector.extract_strided_slice %7 {offsets = [0, 128], sizes = [16, 128], strides = [1, 1]} : vector<16x256xf32> to vector<16x128xf32>
    %27 = vector.extract_strided_slice %0 {offsets = [0, 128], sizes = [16, 128], strides = [1, 1]} : vector<16x256xf32> to vector<16x128xf32>
    %28 = vector.extract_strided_slice %10 {offsets = [0, 128], sizes = [16, 128], strides = [1, 1]} : vector<16x256xf32> to vector<16x128xf32>
    %cst_12 = arith.constant dense<0.000000e+00> : vector<128x128xf32>
    %29 = tpu.matmul %26, %27, %cst_12 {dimension_numbers = #tpu.dot_dimension_numbers<[0], [0], [1], [1], [0, 1, 1, 1], [], []>} : vector<16x128xf32>, vector<16x128xf32>, vector<128x128xf32> -> vector<128x128xf32>
    %cst_13 = arith.constant dense<0xFF800000> : vector<128xf32>
    %30 = vector.multi_reduction <maximumf>, %29, %cst_13 [1] : vector<128x128xf32> to vector<128xf32>
    %31 = vector.shape_cast %30 : vector<128xf32> to vector<128x1xf32>
    %32 = vector.broadcast %31 : vector<128x1xf32> to vector<128x128xf32>
    %33 = arith.subf %29, %32 : vector<128x128xf32>
    %34 = math.exp %33 : vector<128x128xf32>
    %cst_14 = arith.constant dense<0.000000e+00> : vector<128xf32>
    %35 = vector.multi_reduction <add>, %34, %cst_14 [1] : vector<128x128xf32> to vector<128xf32>
    %36 = vector.shape_cast %35 : vector<128xf32> to vector<128x1xf32>
    %37 = tpu.reciprocal %36 : vector<128x1xf32> -> vector<128x1xf32>
    %38 = vector.broadcast %37 : vector<128x1xf32> to vector<128x128xf32>
    %39 = arith.mulf %34, %38 : vector<128x128xf32>
    %cst_15 = arith.constant dense<0.000000e+00> : vector<16x128xf32>
    %40 = tpu.matmul %28, %39, %cst_15 {dimension_numbers = #tpu.dot_dimension_numbers<[1], [0], [0], [1], [0, 0, 1, 1], [], []>} : vector<16x128xf32>, vector<128x128xf32>, vector<16x128xf32> -> vector<16x128xf32>
    %41 = tpu.concatenate %25, %40 in 1 : vector<16x128xf32>, vector<16x128xf32> -> vector<16x256xf32>
    %c0_16 = arith.constant 0 : index
    %c0_17 = arith.constant 0 : index
    %42 = vector.load %arg3[%c0_16, %c0_17] : memref<16x16xf32, #tpu.memory_space<vmem>>, vector<16x16xf32>
    %cst_18 = arith.constant dense<0.000000e+00> : vector<16x256xf32>
    %43 = tpu.matmul %42, %41, %cst_18 {dimension_numbers = #tpu.dot_dimension_numbers<[1], [0], [0], [1], [0, 0, 1, 1], [], []>} : vector<16x16xf32>, vector<16x256xf32>, vector<16x256xf32> -> vector<16x256xf32>
    %44 = vector.broadcast %2 : vector<16x1xf32> to vector<16x256xf32>
    %45 = arith.addf %43, %44 : vector<16x256xf32>
    %cst_19 = arith.constant dense<0.000000e+00> : vector<16xf32>
    %46 = vector.multi_reduction <add>, %45, %cst_19 [1] : vector<16x256xf32> to vector<16xf32>
    %47 = vector.shape_cast %46 : vector<16xf32> to vector<16x1xf32>
    %cst_20 = arith.constant 3.906250e-03 : f32
    %48 = vector.broadcast %cst_20 : f32 to vector<16x1xf32>
    %49 = arith.mulf %47, %48 : vector<16x1xf32>
    %50 = vector.broadcast %49 : vector<16x1xf32> to vector<16x256xf32>
    %51 = arith.subf %45, %50 : vector<16x256xf32>
    %52 = arith.mulf %51, %51 : vector<16x256xf32>
    %cst_21 = arith.constant dense<0.000000e+00> : vector<16xf32>
    %53 = vector.multi_reduction <add>, %52, %cst_21 [1] : vector<16x256xf32> to vector<16xf32>
    %54 = vector.shape_cast %53 : vector<16xf32> to vector<16x1xf32>
    %cst_22 = arith.constant 3.906250e-03 : f32
    %55 = vector.broadcast %cst_22 : f32 to vector<16x1xf32>
    %56 = arith.mulf %54, %55 : vector<16x1xf32>
    %cst_23 = arith.constant 9.99999974E-6 : f32
    %57 = vector.broadcast %cst_23 : f32 to vector<16x1xf32>
    %58 = arith.addf %56, %57 : vector<16x1xf32>
    %59 = math.rsqrt %58 : vector<16x1xf32>
    %60 = arith.mulf %3, %59 : vector<16x1xf32>
    %61 = vector.broadcast %60 : vector<16x1xf32> to vector<16x256xf32>
    %62 = arith.mulf %61, %51 : vector<16x256xf32>
    %63 = vector.broadcast %4 : vector<16x1xf32> to vector<16x256xf32>
    %64 = arith.addf %62, %63 : vector<16x256xf32>
    %cst_24 = arith.constant 0.000000e+00 : f32
    %65 = vector.broadcast %cst_24 : f32 to vector<16x256xf32>
    %66 = arith.maximumf %64, %65 : vector<16x256xf32>
    %67 = arith.addf %0, %66 : vector<16x256xf32>
    %c0_25 = arith.constant 0 : index
    %c0_26 = arith.constant 0 : index
    %68 = vector.load %arg5[%c0_25, %c0_26] : memref<16x256xf32, #tpu.memory_space<vmem>>, vector<16x256xf32>
    tpu.vector_store %arg5[%c0_25, %c0_26], %67 {strides = array<i32>} : memref<16x256xf32, #tpu.memory_space<vmem>>, vector<16x256xf32>,
    return
  }
  func.func @transform_0(%arg0: i32) -> (i32, i32) {
    %c0_i32 = arith.constant 0 : i32
    %c0_i32_0 = arith.constant 0 : i32
    %c0_i32_1 = arith.constant 0 : i32
    return %c0_i32, %c0_i32_0 : i32, i32
  }
  func.func @transform_1(%arg0: i32) -> (i32, i32) {
    %c0_i32 = arith.constant 0 : i32
    %c0_i32_0 = arith.constant 0 : i32
    %c0_i32_1 = arith.constant 0 : i32
    return %c0_i32, %c0_i32_0 : i32, i32
  }
  func.func @transform_2(%arg0: i32) -> (i32, i32) {
    %c0_i32 = arith.constant 0 : i32
    %c0_i32_0 = arith.constant 0 : i32
    %c0_i32_1 = arith.constant 0 : i32
    return %c0_i32, %c0_i32_0 : i32, i32
  }
  func.func @transform_3(%arg0: i32) -> (i32, i32) {
    %c0_i32 = arith.constant 0 : i32
    %c0_i32_0 = arith.constant 0 : i32
    %c0_i32_1 = arith.constant 0 : i32
    return %c0_i32, %c0_i32_0 : i32, i32
  }
  func.func @transform_4(%arg0: i32) -> (i32, i32) {
    %c0_i32 = arith.constant 0 : i32
    %c0_i32_0 = arith.constant 0 : i32
    %c0_i32_1 = arith.constant 0 : i32
    return %c0_i32, %c0_i32_0 : i32, i32
  }
}

</mosaic_0001>

<bundles_post_ra>
// kernel: sa_forward.1
= control target key start
LH: loop header
LB: loop body
LE: loop exit
PB: predicated region body
PF: predicated region fallthrough
CT: control target
= control target key end

     0   :  { %v1581_v3 = vmov 0.0   ;;  %vm27_vm0 = vcmask 130048   ;;  %s2020_s0 = inlined_call_operand.vmem [shape: f32[16,256], index: 0, kind: input, shape index: {}]   ;;  %s2021_s1 = inlined_call_operand.vmem [shape: f32[32,16], index: 1, kind: input, shape index: {}]   ;;  %s2022_s3 = inlined_call_operand.vmem [shape: f32[16,4], index: 3, kind: input, shape index: {}]   ;;  %s2023_s2 = inlined_call_operand.vmem [shape: f32[16,16], index: 2, kind: input, shape index: {}]   ;;  %s2024_s4 = inlined_call_operand.vmem [shape: f32[16,256], index: 4, kind: output, shape index: {}]  }
   0x1   :  { %v20_v0 = vld [vmem:[%s2020_s0 + $0x18] sm:$0xff]  ;;  %v19_v1 = vld [vmem:[%s2020_s0 + $0x10] sm:$0xff]  ;;  %v18_v2 = vld [vmem:[%s2020_s0 + $0x8] sm:$0xff]  ;;  %104 = vmatprep.mubr.f32.mxu0 %v1581_v3 }
   0x2   :  { %68 = vmatprep.subr.mxu0 %v20_v0  ;;  %v17_v4 = vld [vmem:[%s2020_s0] sm:$0xff]  ;;  %1306 = vmatprep.subr.mxu1 %v19_v1  ;;  %v24_v6 = vld [vmem:[%s2021_s1 + $0x8] sm:$0xff]  ;;  %v25_v62 = vld [vmem:[%s2021_s1 + $0x10] sm:$0xff] }
   0x3   :  { %69 = vmatpush1.msra.mxu0 %v19_v1  ;;  %v23_v5 = vld [vmem:[%s2021_s1] sm:$0xff]  ;;  %1307 = vmatpush3.msra.mxu1 %v19_v1 }
   0x4   :  { %70 = vmatprep.subr.mxu0 %v18_v2  ;;  %1308 = vmatprep.subr.mxu1 %v17_v4 }
   0x5   :  { %71 = vmatpush1.msra.mxu0 %v17_v4  ;;  %1309 = vmatpush3.msra.mxu1 %v17_v4 }
   0x6   :  { %1196 = vmatmul.mubr.msk.f32.vlgmr.msra.gmra.mxu0 %vm27_vm0, %v23_v5  ;;  %1369 = vmatprep.subr.mxu1 %v20_v0  ;;  %v26_v5 = vld [vmem:[%s2021_s1 + $0x18] sm:$0xff] }
   0x7   :  { %110 = vmatprep.mubr.f32.mxu0 %v1581_v3 }
   0xa   :  { %1197 = vmatmul.mubr.msk.f32.gmra.mxu0 %vm27_vm0, %v24_v6 }
   0xb   :  { %116 = vmatprep.mubr.f32.mxu0 %v1581_v3 }
   0xe   :  { %1198 = vmatmul.mubr.msk.f32.gmra.mxu0 %vm27_vm0, %v25_v62 }
   0xf   :  { %122 = vmatprep.mubr.f32.mxu0 %v1581_v3 }
  0x12   :  { %1199 = vmatmul.mubr.msk.f32.gmra.mxu0 %vm27_vm0, %v26_v5 }
  0xc6   :  { %v106_v7 = vpop.f32.mrf.mxu0 }
  0xc7   :  { %143 = vxpose.xlu0.b32.start [1/2] (short) %v106_v7, 128 }
  0xc8   :  { %v108_v8 = vpop.f32.mrf.mxu0 }
  0xc9   :  { %587 = vxpose.xlu1.b32.start [1/2] (short) %v108_v8, 128 }
  0xca   :  { %v112_v9 = vpop.f32.mrf.mxu0 }
  0xcb   :  { %144 = vxpose.xlu0.b32.end [2/2] (short) %v112_v9, 128 }
  0xcc   :  { %v114_v10 = vpop.f32.mrf.mxu0 }
  0xcd   :  { %588 = vxpose.xlu1.b32.end [2/2] (short) %v114_v10, 128 }
 0x143   :  { %v159_v11 = vpop.trf.xlu0 }
 0x144   :  { %1310 = vmatprep.mubr.msk.f32.mxu1 %vm27_vm0, %v159_v11 }
 0x145   :  { %v603_v12 = vpop.trf.xlu1 }
 0x147   :  { %v160_v13 = vpop.trf.xlu0 }
 0x148   :  { %1311 = vmatmul.mubr.msk.f32.vlgmr.msra.gmra.mxu1 %vm27_vm0, %v160_v13 }
 0x149   :  { %v604_v14 = vpop.trf.xlu1  ;;  %1370 = vmatpush3.msra.mxu1 %v20_v0 }
 0x14a   :  { %1371 = vmatprep.subr.mxu1 %v18_v2 }
 0x14b   :  { %v161_v15 = vpop.trf.xlu0  ;;  %1372 = vmatpush3.msra.mxu1 %v18_v2 }
 0x14c   :  { %1313 = vmatprep.mubr.msk.f32.mxu1 %vm27_vm0, %v161_v15 }
 0x14d   :  { %v605_v17 = vpop.trf.xlu1 }
 0x14f   :  { %v162_v16 = vpop.trf.xlu0 }
 0x150   :  { %1314 = vmatmul.mubr.msk.f32.gmra.mxu1 %vm27_vm0, %v162_v16 }
 0x151   :  { %v606_v19 = vpop.trf.xlu1 }
 0x153   :  { %v163_v18 = vpop.trf.xlu0 }
 0x154   :  { %1316 = vmatprep.mubr.msk.f32.mxu1 %vm27_vm0, %v163_v18 }
 0x155   :  { %v607_v22 = vpop.trf.xlu1 }
 0x157   :  { %v164_v20 = vpop.trf.xlu0 }
 0x158   :  { %1317 = vmatmul.mubr.msk.f32.gmra.mxu1 %vm27_vm0, %v164_v20 }
 0x159   :  { %v608_v24 = vpop.trf.xlu1 }
 0x15b   :  { %v165_v21 = vpop.trf.xlu0 }
 0x15c   :  { %1319 = vmatprep.mubr.msk.f32.mxu1 %vm27_vm0, %v165_v21 }
 0x15d   :  { %v609_v27 = vpop.trf.xlu1 }
 0x15f   :  { %v166_v23 = vpop.trf.xlu0 }
 0x160   :  { %1320 = vmatmul.mubr.msk.f32.gmra.mxu1 %vm27_vm0, %v166_v23 }
 0x161   :  { %v610_v29 = vpop.trf.xlu1 }
 0x163   :  { %v167_v25 = vpop.trf.xlu0 }
 0x164   :  { %1322 = vmatprep.mubr.msk.f32.mxu1 %vm27_vm0, %v167_v25 }
 0x165   :  { %v611_v32 = vpop.trf.xlu1 }
 0x167   :  { %v168_v26 = vpop.trf.xlu0 }
 0x168   :  { %1323 = vmatmul.mubr.msk.f32.gmra.mxu1 %vm27_vm0, %v168_v26 }
 0x169   :  { %v612_v34 = vpop.trf.xlu1 }
 0x16b   :  { %v169_v28 = vpop.trf.xlu0 }
 0x16c   :  { %1325 = vmatprep.mubr.msk.f32.mxu1 %vm27_vm0, %v169_v28 }
 0x16d   :  { %v613_v37 = vpop.trf.xlu1 }
 0x16f   :  { %v170_v30 = vpop.trf.xlu0 }
 0x170   :  { %1326 = vmatmul.mubr.msk.f32.gmra.mxu1 %vm27_vm0, %v170_v30 }
 0x171   :  { %v614_v38 = vpop.trf.xlu1 }
 0x173   :  { %v171_v31 = vpop.trf.xlu0 }
 0x174   :  { %1328 = vmatprep.mubr.msk.f32.mxu1 %vm27_vm0, %v171_v31 }
 0x175   :  { %v615_v39 = vpop.trf.xlu1 }
 0x177   :  { %v172_v33 = vpop.trf.xlu0 }
 0x178   :  { %1329 = vmatmul.mubr.msk.f32.gmra.mxu1 %vm27_vm0, %v172_v33 }
 0x179   :  { %v616_v40 = vpop.trf.xlu1 }
 0x17b   :  { %v173_v35 = vpop.trf.xlu0 }
 0x17c   :  { %1331 = vmatprep.mubr.msk.f32.mxu1 %vm27_vm0, %v173_v35 }
 0x17d   :  { %v617_v41 = vpop.trf.xlu1 }
 0x17f   :  { %v174_v36 = vpop.trf.xlu0 }
 0x180   :  { %1332 = vmatmul.mubr.msk.f32.gmra.mxu1 %vm27_vm0, %v174_v36 }
 0x181   :  { %1373 = vmatprep.mubr.msk.f32.mxu1 %vm27_vm0, %v603_v12  ;;  %v618_v42 = vpop.trf.xlu1 }
 0x184   :  { %1374 = vmatmul.mubr.msk.f32.vlgmr.msra.gmra.mxu1 %vm27_vm0, %v604_v14  ;;  %v1582_v14 = vmov 0  }
 0x185   :  { %1376 = vmatprep.mubr.msk.f32.mxu1 %vm27_vm0, %v605_v17  ;;  %1437 = vset.pattern.permute.xlu1 %v1582_v14 }
 0x186   :  { %1438 = vset.pattern.permute.xlu0 %v1582_v14 }
 0x188   :  { %1377 = vmatmul.mubr.msk.f32.gmra.mxu1 %vm27_vm0, %v606_v19 }
 0x189   :  { %1379 = vmatprep.mubr.msk.f32.mxu1 %vm27_vm0, %v607_v22 }
 0x18c   :  { %1380 = vmatmul.mubr.msk.f32.gmra.mxu1 %vm27_vm0, %v608_v24 }
 0x18d   :  { %1382 = vmatprep.mubr.msk.f32.mxu1 %vm27_vm0, %v609_v27 }
 0x190   :  { %1383 = vmatmul.mubr.msk.f32.gmra.mxu1 %vm27_vm0, %v610_v29 }
 0x191   :  { %1385 = vmatprep.mubr.msk.f32.mxu1 %vm27_vm0, %v611_v32 }
 0x194   :  { %1386 = vmatmul.mubr.msk.f32.gmra.mxu1 %vm27_vm0, %v612_v34 }
 0x195   :  { %1388 = vmatprep.mubr.msk.f32.mxu1 %vm27_vm0, %v613_v37 }
 0x198   :  { %1389 = vmatmul.mubr.msk.f32.gmra.mxu1 %vm27_vm0, %v614_v38 }
 0x199   :  { %1391 = vmatprep.mubr.msk.f32.mxu1 %vm27_vm0, %v615_v39 }
 0x19c   :  { %1392 = vmatmul.mubr.msk.f32.gmra.mxu1 %vm27_vm0, %v616_v40 }
 0x19d   :  { %1394 = vmatprep.mubr.msk.f32.mxu1 %vm27_vm0, %v617_v41 }
 0x1a0   :  { %1395 = vmatmul.mubr.msk.f32.gmra.mxu1 %vm27_vm0, %v618_v42 }
 0x1a1   :  { %1111 = vmatprep.mubr.f32.mxu1 %v1581_v3 }
 0x208   :  { %v1667_v43 = vpop.f32.mrf.mxu1 }
 0x209   :  { %370 = vmax.xlane.f32.xlu0 %v1667_v43 }
 0x20a   :  { %v1670_v44 = vpop.f32.mrf.mxu1 }
 0x20b   :  { %368 = vmax.xlane.f32.xlu1 %v1670_v44 }
 0x210   :  { %v1673_v45 = vpop.f32.mrf.mxu1 }
 0x211   :  { %374 = vmax.xlane.f32.xlu0 %v1673_v45 }
 0x212   :  { %v1676_v46 = vpop.f32.mrf.mxu1 }
 0x213   :  { %372 = vmax.xlane.f32.xlu1 %v1676_v46 }
 0x218   :  { %v1679_v47 = vpop.f32.mrf.mxu1 }
 0x219   :  { %378 = vmax.xlane.f32.xlu0 %v1679_v47 }
 0x21a   :  { %v1682_v48 = vpop.f32.mrf.mxu1 }
 0x21b   :  { %376 = vmax.xlane.f32.xlu1 %v1682_v48 }
 0x220   :  { %v1685_v49 = vpop.f32.mrf.mxu1 }
 0x221   :  { %382 = vmax.xlane.f32.xlu0 %v1685_v49 }
 0x222   :  { %v1688_v50 = vpop.f32.mrf.mxu1 }
 0x223   :  { %380 = vmax.xlane.f32.xlu1 %v1688_v50 }
 0x228   :  { %v1691_v51 = vpop.f32.mrf.mxu1 }
 0x229   :  { %386 = vmax.xlane.f32.xlu0 %v1691_v51 }
 0x22a   :  { %v1694_v52 = vpop.f32.mrf.mxu1 }
 0x22b   :  { %384 = vmax.xlane.f32.xlu1 %v1694_v52 }
 0x230   :  { %v1697_v53 = vpop.f32.mrf.mxu1 }
 0x231   :  { %390 = vmax.xlane.f32.xlu0 %v1697_v53 }
 0x232   :  { %v1700_v54 = vpop.f32.mrf.mxu1 }
 0x233   :  { %388 = vmax.xlane.f32.xlu1 %v1700_v54 }
 0x238   :  { %v1703_v55 = vpop.f32.mrf.mxu1 }
 0x239   :  { %394 = vmax.xlane.f32.xlu1 %v1703_v55 }
 0x23a   :  { %v1706_v56 = vpop.f32.mrf.mxu1 }
 0x23d   :  { %392 = vmax.xlane.f32.xlu1 %v1706_v56 }
 0x240   :  { %v1709_v57 = vpop.f32.mrf.mxu1 }
 0x241   :  { %398 = vmax.xlane.f32.xlu0 %v1709_v57 }
 0x242   :  { %v1712_v58 = vpop.f32.mrf.mxu1 }
 0x243   :  { %396 = vmax.xlane.f32.xlu1 %v1712_v58 }
 0x244   :  { %v1715_v59 = vpop.f32.mrf.mxu1 }
 0x245   :  { %814 = vmax.xlane.f32.xlu0 %v1715_v59 }
 0x246   :  { %v1718_v60 = vpop.f32.mrf.mxu1 }
 0x247   :  { %812 = vmax.xlane.f32.xlu1 %v1718_v60 }
 0x248   :  { %v1721_v61 = vpop.f32.mrf.mxu1 }
 0x249   :  { %818 = vmax.xlane.f32.xlu0 %v1721_v61 }
 0x24a   :  { %v1727_v63 = vpop.f32.mrf.mxu1 }
 0x24b   :  { %816 = vmax.xlane.f32.xlu1 %v1727_v63 }
 0x24c   :  { %v1732_v0 = vpop.f32.mrf.mxu1 }
 0x24d   :  { %822 = vmax.xlane.f32.xlu0 %v1732_v0 }
 0x24e   :  { %v1735_v1 = vpop.f32.mrf.mxu1 }
 0x24f   :  { %820 = vmax.xlane.f32.xlu1 %v1735_v1 }
 0x250   :  { %v1738_v2 = vpop.f32.mrf.mxu1 }
 0x251   :  { %826 = vmax.xlane.f32.xlu0 %v1738_v2 }
 0x252   :  { %v1741_v4 = vpop.f32.mrf.mxu1 }
 0x253   :  { %824 = vmax.xlane.f32.xlu1 %v1741_v4 }
 0x254   :  { %v1747_v6 = vpop.f32.mrf.mxu1 }
 0x255   :  { %830 = vmax.xlane.f32.xlu0 %v1747_v6 }
 0x256   :  { %v1751_v7 = vpop.f32.mrf.mxu1 }
 0x257   :  { %828 = vmax.xlane.f32.xlu1 %v1751_v7 }
 0x258   :  { %v1754_v8 = vpop.f32.mrf.mxu1 }
 0x259   :  { %834 = vmax.xlane.f32.xlu0 %v1754_v8 }
 0x25a   :  { %v1757_v9 = vpop.f32.mrf.mxu1 }
 0x25b   :  { %832 = vmax.xlane.f32.xlu1 %v1757_v9 }
 0x25c   :  { %v1760_v10 = vpop.f32.mrf.mxu1 }
 0x25d   :  { %838 = vmax.xlane.f32.xlu0 %v1760_v10 }
 0x25e   :  { %v1763_v11 = vpop.f32.mrf.mxu1 }
 0x25f   :  { %836 = vmax.xlane.f32.xlu1 %v1763_v11 }
 0x260   :  { %v1766_v12 = vpop.f32.mrf.mxu1 }
 0x261   :  { %842 = vmax.xlane.f32.xlu0 %v1766_v12 }
 0x262   :  { %v1769_v13 = vpop.f32.mrf.mxu1 }
 0x263   :  { %840 = vmax.xlane.f32.xlu1 %v1769_v13 }
 0x292   :  { %v371_v15 = vpop.xlane.xlu0 %370 }
 0x293   :  { %v401_v16 = vsub.f32 %v1667_v43, %v371_v15 }
 0x294   :  { %v369_v17 = vpop.xlane.xlu1 %368 }
 0x295   :  { %v418_v18 = vmul.f32 1.442695, %v401_v16  ;;  %v400_v19 = vsub.f32 %v1670_v44, %v369_v17 }
 0x297   :  { %1445 = vpow2.f32 %v418_v18  ;;  %v416_v20 = vmul.f32 1.442695, %v400_v19 }
 0x299   :  { %1447 = vpow2.f32 %v416_v20 }
 0x29a   :  { %v375_v21 = vpop.xlane.xlu0 %374 }
 0x29b   :  { %v403_v22 = vsub.f32 %v1673_v45, %v375_v21 }
 0x29c   :  { %v373_v23 = vpop.xlane.xlu1 %372 }
 0x29d   :  { %v422_v24 = vmul.f32 1.442695, %v403_v22  ;;  %v402_v25 = vsub.f32 %v1676_v46, %v373_v23 }
 0x29f   :  { %1449 = vpow2.f32 %v422_v24  ;;  %v420_v26 = vmul.f32 1.442695, %v402_v25 }
 0x2a1   :  { %1451 = vpow2.f32 %v420_v26 }
 0x2a2   :  { %v379_v27 = vpop.xlane.xlu0 %378 }
 0x2a3   :  { %v405_v28 = vsub.f32 %v1679_v47, %v379_v27 }
 0x2a4   :  { %v1777_v29 = vpop.eup %1445  ;;  %v377_v30 = vpop.xlane.xlu1 %376 }
 0x2a5   :  { %v426_v31 = vmul.f32 1.442695, %v405_v28  ;;  %v404_v32 = vsub.f32 %v1682_v48, %v377_v30  ;;  %450 = vadd.xlane.f32.xlu0 %v1777_v29 }
 0x2a6   :  { %v1781_v33 = vpop.eup %1447 }
 0x2a7   :  { %1453 = vpow2.f32 %v426_v31  ;;  %v424_v34 = vmul.f32 1.442695, %v404_v32  ;;  %448 = vadd.xlane.f32.xlu1 %v1781_v33 }
 0x2a9   :  { %1455 = vpow2.f32 %v424_v34 }
 0x2aa   :  { %v383_v35 = vpop.xlane.xlu0 %382 }
 0x2ab   :  { %v407_v36 = vsub.f32 %v1685_v49, %v383_v35 }
 0x2ac   :  { %v1785_v37 = vpop.eup %1449  ;;  %v381_v38 = vpop.xlane.xlu1 %380 }
 0x2ad   :  { %v430_v39 = vmul.f32 1.442695, %v407_v36  ;;  %v406_v40 = vsub.f32 %v1688_v50, %v381_v38  ;;  %454 = vadd.xlane.f32.xlu0 %v1785_v37 }
 0x2ae   :  { %v1789_v41 = vpop.eup %1451 }
 0x2af   :  { %1457 = vpow2.f32 %v430_v39  ;;  %v428_v42 = vmul.f32 1.442695, %v406_v40  ;;  %452 = vadd.xlane.f32.xlu1 %v1789_v41 }
 0x2b1   :  { %1459 = vpow2.f32 %v428_v42 }
 0x2b2   :  { %v387_v43 = vpop.xlane.xlu0 %386 }
 0x2b3   :  { %v409_v44 = vsub.f32 %v1691_v51, %v387_v43 }
 0x2b4   :  { %v1793_v45 = vpop.eup %1453  ;;  %v385_v46 = vpop.xlane.xlu1 %384 }
 0x2b5   :  { %v434_v47 = vmul.f32 1.442695, %v409_v44  ;;  %v408_v48 = vsub.f32 %v1694_v52, %v385_v46  ;;  %458 = vadd.xlane.f32.xlu0 %v1793_v45 }
 0x2b6   :  { %v1797_v49 = vpop.eup %1455 }
 0x2b7   :  { %1461 = vpow2.f32 %v434_v47  ;;  %v432_v50 = vmul.f32 1.442695, %v408_v48  ;;  %456 = vadd.xlane.f32.xlu1 %v1797_v49 }
 0x2b9   :  { %1463 = vpow2.f32 %v432_v50 }
 0x2ba   :  { %v391_v62 = vpop.xlane.xlu0 %390 }
 0x2bb   :  { %v411_v5 = vsub.f32 %v1697_v53, %v391_v62 }
 0x2bc   :  { %v1801_v14 = vpop.eup %1457  ;;  %v389_v51 = vpop.xlane.xlu1 %388 }
 0x2bd   :  { %v438_v15 = vmul.f32 1.442695, %v411_v5  ;;  %v410_v16 = vsub.f32 %v1700_v54, %v389_v51  ;;  %462 = vadd.xlane.f32.xlu0 %v1801_v14 }
 0x2be   :  { %v1805_v52 = vpop.eup %1459 }
 0x2bf   :  { %1465 = vpow2.f32 %v438_v15  ;;  %v436_v17 = vmul.f32 1.442695, %v410_v16  ;;  %460 = vadd.xlane.f32.xlu1 %v1805_v52 }
 0x2c1   :  { %1467 = vpow2.f32 %v436_v17 }
 0x2c2   :  { %v395_v18 = vpop.xlane.xlu1 %394 }
 0x2c3   :  { %v413_v19 = vsub.f32 %v1703_v55, %v395_v18 }
 0x2c4   :  { %v1809_v20 = vpop.eup %1461 }
 0x2c5   :  { %v442_v53 = vmul.f32 1.442695, %v413_v19  ;;  %466 = vadd.xlane.f32.xlu0 %v1809_v20 }
 0x2c6   :  { %v1812_v21 = vpop.eup %1463  ;;  %v393_v54 = vpop.xlane.xlu1 %392 }
 0x2c7   :  { %1469 = vpow2.f32 %v442_v53  ;;  %v412_v22 = vsub.f32 %v1706_v56, %v393_v54  ;;  %464 = vadd.xlane.f32.xlu1 %v1812_v21 }
 0x2c9   :  { %v440_v23 = vmul.f32 1.442695, %v412_v22 }
 0x2ca   :  { %v399_v24 = vpop.xlane.xlu0 %398 }
 0x2cb   :  { %1471 = vpow2.f32 %v440_v23  ;;  %v415_v25 = vsub.f32 %v1709_v57, %v399_v24 }
 0x2cc   :  { %v1817_v26 = vpop.eup %1465  ;;  %v397_v55 = vpop.xlane.xlu1 %396 }
 0x2cd   :  { %v446_v27 = vmul.f32 1.442695, %v415_v25  ;;  %v414_v28 = vsub.f32 %v1712_v58, %v397_v55  ;;  %470 = vadd.xlane.f32.xlu0 %v1817_v26 }
 0x2ce   :  { %v1821_v30 = vpop.eup %1467  ;;  %v1823_v31 = vpop.xlane.xlu0 %814 }
 0x2cf   :  { %1473 = vpow2.f32 %v446_v27  ;;  %v444_v56 = vmul.f32 1.442695, %v414_v28  ;;  %468 = vadd.xlane.f32.xlu1 %v1821_v30 }
 0x2d0   :  { %v1826_v32 = vpop.xlane.xlu1 %812 }
 0x2d1   :  { %1475 = vpow2.f32 %v444_v56 }
 0x2d2   :  { %v1828_v57 = vpop.xlane.xlu0 %818 }
 0x2d4   :  { %v1830_v34 = vpop.eup %1469  ;;  %v1832_v35 = vpop.xlane.xlu1 %816 }
 0x2d5   :  { %474 = vadd.xlane.f32.xlu0 %v1830_v34 }
 0x2d6   :  { %v823_v58 = vpop.xlane.xlu0 %822 }
 0x2d7   :  { %v849_v36 = vsub.f32 %v1732_v0, %v823_v58 }
 0x2d8   :  { %v1836_v38 = vpop.eup %1471  ;;  %v1838_v39 = vpop.xlane.xlu1 %820 }
 0x2d9   :  { %v870_v40 = vmul.f32 1.442695, %v849_v36  ;;  %472 = vadd.xlane.f32.xlu1 %v1836_v38 }
 0x2da   :  { %v827_v42 = vpop.xlane.xlu0 %826 }
 0x2db   :  { %1477 = vpow2.f32 %v870_v40  ;;  %v851_v43 = vsub.f32 %v1738_v2, %v827_v42 }
 0x2dc   :  { %v1842_v44 = vpop.eup %1473  ;;  %v825_v46 = vpop.xlane.xlu1 %824 }
 0x2dd   :  { %v874_v47 = vmul.f32 1.442695, %v851_v43  ;;  %v850_v48 = vsub.f32 %v1741_v4, %v825_v46  ;;  %478 = vadd.xlane.f32.xlu0 %v1842_v44 }
 0x2de   :  { %v1846_v0 = vpop.eup %1475  ;;  %v831_v50 = vpop.xlane.xlu0 %830 }
 0x2df   :  { %1479 = vpow2.f32 %v874_v47  ;;  %v872_v62 = vmul.f32 1.442695, %v850_v48  ;;  %v853_v5 = vsub.f32 %v1747_v6, %v831_v50  ;;  %476 = vadd.xlane.f32.xlu1 %v1846_v0  ;;  %v1893_v48 = vld [vmem:[%s2022_s3] sm:$0xff]  ;;  %v1899_v50 = vld [vmem:[%s2022_s3 + $0x8] sm:$0xff] }
 0x2e0   :  { %v829_v51 = vpop.xlane.xlu1 %828 }
 0x2e1   :  { %1481 = vpow2.f32 %v872_v62  ;;  %v878_v2 = vmul.f32 1.442695, %v853_v5  ;;  %v852_v15 = vsub.f32 %v1751_v7, %v829_v51  ;;  %v847_v62 = vsub.f32 %v1721_v61, %v1828_v57 }
 0x2e2   :  { %v835_v16 = vpop.xlane.xlu0 %834  ;;  %v848_v5 = vsub.f32 %v1735_v1, %v1838_v39 }
 0x2e3   :  { %1483 = vpow2.f32 %v878_v2  ;;  %v876_v17 = vmul.f32 1.442695, %v852_v15  ;;  %v855_v4 = vsub.f32 %v1754_v8, %v835_v16  ;;  %v866_v51 = vmul.f32 1.442695, %v847_v62 }
 0x2e4   :  { %v833_v18 = vpop.xlane.xlu1 %832  ;;  %v846_v2 = vsub.f32 %v1727_v63, %v1832_v35  ;;  %v868_v15 = vmul.f32 1.442695, %v848_v5  ;;  %v845_v16 = vsub.f32 %v1715_v59, %v1823_v31 }
 0x2e5   :  { %1485 = vpow2.f32 %v876_v17  ;;  %v882_v19 = vmul.f32 1.442695, %v855_v4  ;;  %v854_v53 = vsub.f32 %v1757_v9, %v833_v18  ;;  %v844_v18 = vsub.f32 %v1718_v60, %v1826_v32 }
 0x2e6   :  { %v839_v54 = vpop.xlane.xlu0 %838  ;;  %v864_v17 = vmul.f32 1.442695, %v846_v2  ;;  %v862_v4 = vmul.f32 1.442695, %v845_v16 }
 0x2e7   :  { %1487 = vpow2.f32 %v882_v19  ;;  %v880_v6 = vmul.f32 1.442695, %v854_v53  ;;  %v857_v22 = vsub.f32 %v1760_v10, %v839_v54  ;;  %v860_v61 = vmul.f32 1.442695, %v844_v18 }
 0x2e8   :  { %v1854_v23 = vpop.eup %1477  ;;  %v837_v24 = vpop.xlane.xlu1 %836 }
 0x2e9   :  { %1489 = vpow2.f32 %v880_v6  ;;  %v886_v7 = vmul.f32 1.442695, %v857_v22  ;;  %v856_v25 = vsub.f32 %v1763_v11, %v837_v24  ;;  %902 = vadd.xlane.f32.xlu0 %v1854_v23 }
 0x2ea   :  { %v843_v8 = vpop.xlane.xlu0 %842 }
 0x2eb   :  { %1491 = vpow2.f32 %v886_v7  ;;  %v884_v55 = vmul.f32 1.442695, %v856_v25  ;;  %v859_v27 = vsub.f32 %v1766_v12, %v843_v8 }
 0x2ec   :  { %v1859_v9 = vpop.eup %1479  ;;  %v841_v28 = vpop.xlane.xlu1 %840 }
 0x2ed   :  { %1493 = vpow2.f32 %v884_v55  ;;  %v890_v56 = vmul.f32 1.442695, %v859_v27  ;;  %v858_v10 = vsub.f32 %v1769_v13, %v841_v28  ;;  %906 = vadd.xlane.f32.xlu0 %v1859_v9 }
 0x2ee   :  { %v1863_v58 = vpop.eup %1481 }
 0x2ef   :  { %1495 = vpow2.f32 %v890_v56  ;;  %v888_v11 = vmul.f32 1.442695, %v858_v10  ;;  %904 = vadd.xlane.f32.xlu1 %v1863_v58 }
 0x2f0   :  { %v1866_v36 = vpop.eup %1483 }
 0x2f1   :  { %1497 = vpow2.f32 %v888_v11  ;;  %910 = vadd.xlane.f32.xlu0 %v1866_v36 }
 0x2f2   :  { %v1869_v12 = vpop.eup %1485  ;;  %1499 = vpow2.f32 %v866_v51 }
 0x2f3   :  { %908 = vadd.xlane.f32.xlu1 %v1869_v12  ;;  %1501 = vpow2.f32 %v868_v15 }
 0x2f4   :  { %v1872_v40 = vpop.eup %1487  ;;  %1503 = vpow2.f32 %v864_v17 }
 0x2f5   :  { %914 = vadd.xlane.f32.xlu0 %v1872_v40  ;;  %1505 = vpow2.f32 %v862_v4 }
 0x2f6   :  { %v1875_v13 = vpop.eup %1489  ;;  %1507 = vpow2.f32 %v860_v61 }
 0x2f7   :  { %912 = vadd.xlane.f32.xlu1 %v1875_v13 }
 0x2f8   :  { %v1878_v42 = vpop.eup %1491 }
 0x2f9   :  { %918 = vadd.xlane.f32.xlu0 %v1878_v42 }
 0x2fa   :  { %v1881_v43 = vpop.eup %1493 }
 0x2fb   :  { %916 = vadd.xlane.f32.xlu1 %v1881_v43 }
 0x2fc   :  { %v1884_v46 = vpop.eup %1495 }
 0x2fd   :  { %922 = vadd.xlane.f32.xlu0 %v1884_v46 }
 0x2fe   :  { %v1887_v47 = vpop.eup %1497 }
 0x2ff   :  { %920 = vadd.xlane.f32.xlu1 %v1887_v47  ;;  %v1912_v57 = vpop.eup %1499 }
 0x300   :  { %v1915_v63 = vpop.eup %1501 }
 0x301   :  { %v1918_v1 = vpop.eup %1503 }
 0x302   :  { %v1921_v59 = vpop.eup %1505 }
 0x303   :  { %v1924_v60 = vpop.eup %1507 }
 0x310   :  { %131 = vperm.xlu1 %1437, %v1893_v48  }
 0x313   :  { %136 = vperm.xlu0 %1438, %v1899_v50  }
 0x32e   :  { %v451_v31 = vpop.xlane.xlu0 %450 }
 0x330   :  { %v1927_v32 = vpop.xlane.xlu1 %448 }
 0x332   :  { %898 = vadd.xlane.f32.xlu0 %v1912_v57 }
 0x334   :  { %900 = vadd.xlane.f32.xlu1 %v1915_v63 }
 0x336   :  { %v455_v35 = vpop.xlane.xlu0 %454 }
 0x338   :  { %896 = vadd.xlane.f32.xlu1 %v1918_v1  ;;  %v453_v39 = vpop.xlane.xlu1 %452 }
 0x33c   :  { %894 = vadd.xlane.f32.xlu1 %v1921_v59 }
 0x33e   :  { %v459_v19 = vpop.xlane.xlu0 %458 }
 0x340   :  { %892 = vadd.xlane.f32.xlu1 %v1924_v60  ;;  %v457_v53 = vpop.xlane.xlu1 %456 }
 0x346   :  { %v463_v54 = vpop.xlane.xlu0 %462 }
 0x348   :  { %v461_v6 = vpop.xlane.xlu1 %460 }
 0x34e   :  { %v467_v22 = vpop.xlane.xlu0 %466 }
 0x350   :  { %v465_v24 = vpop.xlane.xlu1 %464 }
 0x356   :  { %v471_v7 = vpop.xlane.xlu0 %470 }
 0x358   :  { %v469_v25 = vpop.xlane.xlu1 %468 }
 0x35e   :  { %v475_v8 = vpop.xlane.xlu0 %474 }
 0x362   :  { %v473_v55 = vpop.xlane.xlu1 %472 }
 0x366   :  { %v479_v27 = vpop.xlane.xlu0 %478 }
 0x367   :  { %1509 = vrcp.f32 %v479_v27  ;;  %v118_v27 = vpop.f32.mrf.mxu0 }
 0x368   :  { %1511 = vrcp.f32 %v475_v8  ;;  %v477_v28 = vpop.xlane.xlu1 %476 }
 0x369   :  { %1513 = vrcp.f32 %v477_v28 }
 0x36a   :  { %1515 = vrcp.f32 %v473_v55 }
 0x36b   :  { %1517 = vrcp.f32 %v471_v7 }
 0x36c   :  { %1519 = vrcp.f32 %v469_v25 }
 0x36d   :  { %1521 = vrcp.f32 %v467_v22 }
 0x36e   :  { %1523 = vrcp.f32 %v465_v24 }
 0x36f   :  { %1525 = vrcp.f32 %v463_v54 }
 0x370   :  { %1527 = vrcp.f32 %v461_v6 }
 0x371   :  { %1529 = vrcp.f32 %v459_v19 }
 0x372   :  { %v1929_v56 = vpop.xlane.xlu0 %902  ;;  %1531 = vrcp.f32 %v457_v53 }
 0x373   :  { %1533 = vrcp.f32 %v455_v35 }
 0x374   :  { %v1510_v10 = vpop.eup %1509  ;;  %1535 = vrcp.f32 %v453_v39 }
 0x375   :  { %v1512_v11 = vpop.eup %1511  ;;  %v511_v62 = vmul.f32 %v1510_v10, %v1842_v44  ;;  %1537 = vrcp.f32 %v451_v31 }
 0x376   :  { %v1514_v5 = vpop.eup %1513  ;;  %v1932_v51 = vpop.xlane.xlu0 %906  ;;  %v509_v17 = vmul.f32 %v1512_v11, %v1830_v34  ;;  %1539 = vrcp.f32 %v1927_v32 }
 0x377   :  { %1334 = vmatprep.subr.mxu0 %v511_v62  ;;  %v510_v2 = vmul.f32 %v1514_v5, %v1846_v0  ;;  %v1516_v15 = vpop.eup %1515  ;;  %v120_v5 = vpop.f32.mrf.mxu0 }
 0x378   :  { %1335 = vmatpush3.msra.mxu0 %v511_v62  ;;  %v1935_v16 = vpop.xlane.xlu1 %904  ;;  %v1518_v4 = vpop.eup %1517  ;;  %v508_v44 = vmul.f32 %v1516_v15, %v1836_v38 }
 0x379   :  { %1336 = vmatprep.subr.mxu0 %v510_v2  ;;  %v1520_v61 = vpop.eup %1519  ;;  %v507_v0 = vmul.f32 %v1518_v4, %v1817_v26 }
 0x37a   :  { %v1938_v18 = vpop.xlane.xlu0 %910  ;;  %1337 = vmatpush3.msra.mxu0 %v510_v2  ;;  %v1522_v19 = vpop.eup %1521  ;;  %v506_v34 = vmul.f32 %v1520_v61, %v1821_v30 }
 0x37b   :  { %1338 = vmatprep.subr.mxu0 %v509_v17  ;;  %v1524_v22 = vpop.eup %1523  ;;  %v505_v38 = vmul.f32 %v1522_v19, %v1809_v20 }
 0x37c   :  { %1339 = vmatpush3.msra.mxu0 %v509_v17  ;;  %v1941_v54 = vpop.xlane.xlu1 %908  ;;  %v1526_v24 = vpop.eup %1525  ;;  %v504_v26 = vmul.f32 %v1524_v22, %v1812_v21 }
 0x37d   :  { %1340 = vmatprep.subr.mxu0 %v508_v44  ;;  %v1528_v35 = vpop.eup %1527  ;;  %v503_v30 = vmul.f32 %v1526_v24, %v1801_v14 }
 0x37e   :  { %v915_v6 = vpop.xlane.xlu0 %914  ;;  %1341 = vmatpush3.msra.mxu0 %v508_v44  ;;  %v1530_v25 = vpop.eup %1529  ;;  %v502_v20 = vmul.f32 %v1528_v35, %v1805_v52 }
 0x37f   :  { %1342 = vmatprep.subr.mxu0 %v507_v0  ;;  %v1532_v31 = vpop.eup %1531  ;;  %v501_v21 = vmul.f32 %v1530_v25, %v1793_v45 }
 0x380   :  { %1343 = vmatpush3.msra.mxu0 %v507_v0  ;;  %v913_v53 = vpop.xlane.xlu1 %912  ;;  %v1534_v55 = vpop.eup %1533  ;;  %v500_v14 = vmul.f32 %v1532_v31, %v1797_v49 }
 0x381   :  { %1344 = vmatprep.subr.mxu0 %v506_v34  ;;  %v1536_v28 = vpop.eup %1535  ;;  %v499_v11 = vmul.f32 %v1534_v55, %v1785_v37  ;;  %v124_v49 = vpop.f32.mrf.mxu0 }
 0x382   :  { %v919_v7 = vpop.xlane.xlu0 %918  ;;  %1345 = vmatpush3.msra.mxu0 %v506_v34  ;;  %v1538_v62 = vpop.eup %1537  ;;  %v498_v45 = vmul.f32 %v1536_v28, %v1789_v41 }
 0x383   :  { %1346 = vmatprep.subr.mxu0 %v505_v38  ;;  %v1540_v2 = vpop.eup %1539  ;;  %v497_v17 = vmul.f32 %v1538_v62, %v1777_v29  ;;  %v126_v31 = vpop.f32.mrf.mxu0 }
 0x384   :  { %1347 = vmatpush3.msra.mxu0 %v505_v38  ;;  %v917_v39 = vpop.xlane.xlu1 %916  ;;  %v496_v4 = vmul.f32 %v1540_v2, %v1781_v33 }
 0x385   :  { %1348 = vmatprep.subr.mxu0 %v504_v26 }
 0x386   :  { %v923_v8 = vpop.xlane.xlu0 %922  ;;  %1349 = vmatpush3.msra.mxu0 %v504_v26 }
 0x387   :  { %1541 = vrcp.f32 %v923_v8  ;;  %1350 = vmatprep.subr.mxu0 %v503_v30 }
 0x388   :  { %1543 = vrcp.f32 %v919_v7  ;;  %1351 = vmatpush3.msra.mxu0 %v503_v30  ;;  %v921_v32 = vpop.xlane.xlu1 %920 }
 0x389   :  { %1545 = vrcp.f32 %v921_v32  ;;  %1352 = vmatprep.subr.mxu0 %v502_v20 }
 0x38a   :  { %1353 = vmatpush3.msra.mxu0 %v502_v20  ;;  %1547 = vrcp.f32 %v917_v39 }
 0x38b   :  { %1354 = vmatprep.subr.mxu0 %v501_v21  ;;  %1549 = vrcp.f32 %v915_v6 }
 0x38c   :  { %1355 = vmatpush3.msra.mxu0 %v501_v21  ;;  %v132_v10 = vpop.permute.xlu1 %131  ;;  %1551 = vrcp.f32 %v913_v53 }
 0x38d   :  { %v139_v52 = vadd.f32 %v132_v10, %v118_v27  ;;  %1356 = vmatprep.subr.mxu0 %v500_v14  ;;  %1553 = vrcp.f32 %v1938_v18  ;;  %v140_v0 = vadd.f32 %v132_v10, %v120_v5  ;;  %v1032_v27 = vld [vmem:[%s2023_s2 + $0x8] sm:$0xff] }
 0x38e   :  { %1357 = vmatpush3.msra.mxu0 %v500_v14  ;;  %v1954_v15 = vpop.permute.xlu0 %136  ;;  %1555 = vrcp.f32 %v1941_v54 }
 0x38f   :  { %1358 = vmatprep.subr.mxu0 %v499_v11  ;;  %1366 = vmatprep.mubr.f32.mxu0 %v139_v52  ;;  %v141_v37 = vadd.f32 %v1954_v15, %v124_v49  ;;  %1557 = vrcp.f32 %v1932_v51  ;;  %v142_v32 = vadd.f32 %v1954_v15, %v126_v31 }
 0x390   :  { %1359 = vmatpush3.msra.mxu0 %v499_v11  ;;  %1559 = vrcp.f32 %v1935_v16 }
 0x391   :  { %1360 = vmatprep.subr.mxu0 %v498_v45  ;;  %1561 = vrcp.f32 %v1929_v56 }
 0x392   :  { %1361 = vmatpush3.msra.mxu0 %v498_v45 }
 0x393   :  { %1362 = vmatprep.subr.mxu0 %v497_v17 }
 0x394   :  { %v1542_v44 = vpop.eup %1541  ;;  %1363 = vmatpush3.msra.mxu0 %v497_v17 }
 0x395   :  { %v1544_v41 = vpop.eup %1543  ;;  %1364 = vmatprep.subr.mxu0 %v496_v4  ;;  %v955_v61 = vmul.f32 %v1542_v44, %v1884_v46 }
 0x396   :  { %v1546_v18 = vpop.eup %1545  ;;  %1365 = vmatpush3.msra.mxu0 %v496_v4  ;;  %v953_v33 = vmul.f32 %v1544_v41, %v1878_v42 }
 0x397   :  { %1367 = vmatmul.mubr.f32.vlgmr.msra.gmra.mxu0 %v141_v37  ;;  %1397 = vmatprep.subr.mxu0 %v955_v61  ;;  %v954_v29 = vmul.f32 %v1546_v18, %v1887_v47  ;;  %v1548_v54 = vpop.eup %1547 }
 0x398   :  { %1398 = vmatpush3.msra.mxu0 %v955_v61  ;;  %1429 = vmatprep.mubr.f32.mxu0 %v140_v0  ;;  %v1550_v51 = vpop.eup %1549  ;;  %v952_v46 = vmul.f32 %v1548_v54, %v1881_v43 }
 0x399   :  { %1399 = vmatprep.subr.mxu0 %v954_v29  ;;  %v1552_v19 = vpop.eup %1551  ;;  %v951_v16 = vmul.f32 %v1550_v51, %v1872_v40 }
 0x39a   :  { %1400 = vmatpush3.msra.mxu0 %v954_v29  ;;  %v1554_v6 = vpop.eup %1553  ;;  %v950_v47 = vmul.f32 %v1552_v19, %v1875_v13 }
 0x39b   :  { %1401 = vmatprep.subr.mxu0 %v953_v33  ;;  %v1556_v34 = vpop.eup %1555  ;;  %v949_v42 = vmul.f32 %v1554_v6, %v1866_v36  ;;  %v1585_v6 = vmov 2  }
 0x39c   :  { %1402 = vmatpush3.msra.mxu0 %v953_v33  ;;  %v1558_v56 = vpop.eup %1557  ;;  %v948_v43 = vmul.f32 %v1556_v34, %v1869_v12 }
 0x39d   :  { %1403 = vmatprep.subr.mxu0 %v952_v46  ;;  %v1560_v22 = vpop.eup %1559  ;;  %v947_v40 = vmul.f32 %v1558_v56, %v1859_v9 }
 0x39e   :  { %1404 = vmatpush3.msra.mxu0 %v952_v46  ;;  %v1562_v53 = vpop.eup %1561  ;;  %v946_v13 = vmul.f32 %v1560_v22, %v1863_v58 }
 0x39f   :  { %1405 = vmatprep.subr.mxu0 %v951_v16  ;;  %v945_v38 = vmul.f32 %v1562_v53, %v1854_v23 }
 0x3a0   :  { %1406 = vmatpush3.msra.mxu0 %v951_v16  ;;  %v1584_v16 = vmov 3  }
 0x3a1   :  { %1407 = vmatprep.subr.mxu0 %v950_v47 }
 0x3a2   :  { %1408 = vmatpush3.msra.mxu0 %v950_v47 }
 0x3a3   :  { %1409 = vmatprep.subr.mxu0 %v949_v42 }
 0x3a4   :  { %1410 = vmatpush3.msra.mxu0 %v949_v42 }
 0x3a5   :  { %1411 = vmatprep.subr.mxu0 %v948_v43 }
 0x3a6   :  { %1412 = vmatpush3.msra.mxu0 %v948_v43 }
 0x3a7   :  { %1413 = vmatprep.subr.mxu0 %v947_v40 }
 0x3a8   :  { %1414 = vmatpush3.msra.mxu0 %v947_v40 }
 0x3a9   :  { %1415 = vmatprep.subr.mxu0 %v946_v13 }
 0x3aa   :  { %1416 = vmatpush3.msra.mxu0 %v946_v13 }
 0x3ab   :  { %1417 = vmatprep.subr.mxu0 %v945_v38 }
 0x3ac   :  { %1418 = vmatpush3.msra.mxu0 %v945_v38 }
 0x3bb   :  { %v899_v36 = vpop.xlane.xlu0 %898 }
 0x3bc   :  { %1563 = vrcp.f32 %v899_v36 }
 0x3bd   :  { %v901_v12 = vpop.xlane.xlu1 %900 }
 0x3be   :  { %1565 = vrcp.f32 %v901_v12 }
 0x3c1   :  { %v897_v24 = vpop.xlane.xlu1 %896 }
 0x3c2   :  { %1567 = vrcp.f32 %v897_v24 }
 0x3c5   :  { %v895_v7 = vpop.xlane.xlu1 %894 }
 0x3c6   :  { %1569 = vrcp.f32 %v895_v7 }
 0x3c9   :  { %v893_v9 = vpop.xlane.xlu1 %892  ;;  %v1564_v26 = vpop.eup %1563 }
 0x3ca   :  { %1571 = vrcp.f32 %v893_v9  ;;  %v943_v23 = vmul.f32 %v1564_v26, %v1912_v57  ;;  %v1583_v57 = vmov 1  }
 0x3cb   :  { %v1566_v35 = vpop.eup %1565  ;;  %1439 = vset.pattern.permute.xlu1 %v1583_v57  ;;  %1440 = vset.pattern.permute.xlu0 %v1583_v57 }
 0x3cc   :  { %v944_v58 = vmul.f32 %v1566_v35, %v1915_v63  ;;  %1034 = vperm.xlu1 %1439, %v1893_v48   ;;  %1038 = vperm.xlu0 %1440, %v1899_v50  }
 0x3ce   :  { %1419 = vmatprep.subr.mxu0 %v944_v58 }
 0x3cf   :  { %v1568_v39 = vpop.eup %1567  ;;  %1420 = vmatpush3.msra.mxu0 %v944_v58 }
 0x3d0   :  { %1421 = vmatprep.subr.mxu0 %v943_v23  ;;  %v942_v30 = vmul.f32 %v1568_v39, %v1918_v1  ;;  %1441 = vset.pattern.permute.xlu1 %v1584_v16 }
 0x3d1   :  { %1422 = vmatpush3.msra.mxu0 %v943_v23  ;;  %1444 = vset.pattern.permute.xlu0 %v1584_v16 }
 0x3d2   :  { %1423 = vmatprep.subr.mxu0 %v942_v30 }
 0x3d3   :  { %v1570_v25 = vpop.eup %1569  ;;  %1424 = vmatpush3.msra.mxu0 %v942_v30  ;;  %v1578_v30 = vld [vmem:[%s2020_s0 + $0x8] sm:$0xff] }
 0x3d4   :  { %v941_v8 = vmul.f32 %v1570_v25, %v1921_v59 }
 0x3d6   :  { %1425 = vmatprep.subr.mxu0 %v941_v8 }
 0x3d7   :  { %v1572_v20 = vpop.eup %1571  ;;  %1426 = vmatpush3.msra.mxu0 %v941_v8 }
 0x3d8   :  { %v940_v63 = vmul.f32 %v1572_v20, %v1924_v60  ;;  %v1031_v60 = vld [vmem:[%s2023_s2] sm:$0xff] }
 0x3da   :  { %1427 = vmatprep.subr.mxu0 %v940_v63 }
 0x3db   :  { %1428 = vmatpush3.msra.mxu0 %v940_v63 }
 0x3dc   :  { %1430 = vmatmul.mubr.f32.vlgmr.msra.gmra.mxu0 %v142_v32 }
 0x447   :  { %v1035_v28 = vpop.permute.xlu1 %1034  ;;  %v1039_v5 = vpop.permute.xlu0 %1038 }
 0x457   :  { %v1368_v1 = vpop.f32.mrf.mxu0 }
 0x459   :  { %v578_v59 = vpop.f32.mrf.mxu0 }
 0x49c   :  { %v1431_v21 = vpop.f32.mrf.mxu0 }
 0x49d   :  { %1075 = vmatprep.subr.mxu1 %v1431_v21  ;;  %v1580_v21 = vld [vmem:[%s2020_s0 + $0x18] sm:$0xff] }
 0x49e   :  { %v1022_v55 = vpop.f32.mrf.mxu0  ;;  %1076 = vmatpush1.msra.mxu1 %v1368_v1  ;;  %v1579_v1 = vld [vmem:[%s2020_s0 + $0x10] sm:$0xff] }
 0x49f   :  { %1077 = vmatprep.subr.mxu1 %v1022_v55 }
 0x4a0   :  { %1078 = vmatpush1.msra.mxu1 %v578_v59 }
 0x4a1   :  { %1232 = vmatmul.mubr.msk.f32.vlgmr.msra.gmra.mxu1 %vm27_vm0, %v1031_v60 }
 0x4a2   :  { %1117 = vmatprep.mubr.f32.mxu1 %v1581_v3 }
 0x4a5   :  { %1233 = vmatmul.mubr.msk.f32.gmra.mxu1 %vm27_vm0, %v1032_v27 }
 0x561   :  { %v1113_v14 = vpop.f32.mrf.mxu1 }
 0x562   :  { %v1114_v52 = vadd.f32 %v1113_v14, %v1035_v28 }
 0x563   :  { %v1115_v10 = vpop.f32.mrf.mxu1 }
 0x564   :  { %v1116_v11 = vadd.f32 %v1115_v10, %v1035_v28 }
 0x565   :  { %v1119_v62 = vpop.f32.mrf.mxu1 }
 0x566   :  { %v1124_v45 = vadd.f32 %v1116_v11, %v1114_v52  ;;  %v1120_v15 = vadd.f32 %v1119_v62, %v1039_v5 }
 0x567   :  { %v1121_v2 = vpop.f32.mrf.mxu1 }
 0x568   :  { %v1122_v49 = vadd.f32 %v1121_v2, %v1039_v5  ;;  %1125 = vadd.xlane.f32.xlu1 %v1124_v45 }
 0x56a   :  { %v1127_v17 = vadd.f32 %v1122_v49, %v1120_v15 }
 0x56c   :  { %1128 = vadd.xlane.f32.xlu1 %v1127_v17 }
 0x5f1   :  { %v1126_v3 = vpop.xlane.xlu1 %1125 }
 0x5f2   :  { %v1130_v37 = vmul.f32 0.00390625, %v1126_v3 }
 0x5f4   :  { %v1132_v4 = vsub.f32 %v1114_v52, %v1130_v37  ;;  %v1133_v44 = vsub.f32 %v1116_v11, %v1130_v37 }
 0x5f5   :  { %v1129_v41 = vpop.xlane.xlu1 %1128 }
 0x5f6   :  { %v1131_v61 = vmul.f32 0.00390625, %v1129_v41  ;;  %v1136_v18 = vmul.f32 %v1132_v4, %v1132_v4  ;;  %v1137_v0 = vmul.f32 %v1133_v44, %v1133_v44 }
 0x5f8   :  { %v1134_v29 = vsub.f32 %v1120_v15, %v1131_v61  ;;  %v1135_v54 = vsub.f32 %v1122_v49, %v1131_v61  ;;  %v1140_v33 = vadd.f32 %v1137_v0, %v1136_v18 }
 0x5fa   :  { %v1138_v51 = vmul.f32 %v1134_v29, %v1134_v29  ;;  %v1139_v46 = vmul.f32 %v1135_v54, %v1135_v54  ;;  %1141 = vadd.xlane.f32.xlu0 %v1140_v33 }
 0x5fc   :  { %v1143_v19 = vadd.f32 %v1139_v46, %v1138_v51 }
 0x5fe   :  { %1144 = vadd.xlane.f32.xlu1 %v1143_v19 }
 0x60f   :  { %1169 = vperm.xlu1 %1441, %v1893_v48  }
 0x613   :  { %1442 = vset.pattern.permute.xlu1 %v1585_v6 }
 0x683   :  { %v1142_v47 = vpop.xlane.xlu0 %1141 }
 0x684   :  { %v1146_v34 = vmul.f32 0.00390625, %v1142_v47 }
 0x686   :  { %v1148_v42 = vadd.f32 1e-05, %v1146_v34 }
 0x687   :  { %v1145_v56 = vpop.xlane.xlu1 %1144 }
 0x688   :  { %1573 = vrsqrt.f32 %v1148_v42  ;;  %v1147_v43 = vmul.f32 0.00390625, %v1145_v56 }
 0x68a   :  { %v1149_v22 = vadd.f32 1e-05, %v1147_v43 }
 0x68b   :  { %v1170_v36 = vpop.permute.xlu1 %1169 }
 0x68c   :  { %1575 = vrsqrt.f32 %v1149_v22 }
 0x695   :  { %v1574_v40 = vpop.eup %1573 }
 0x696   :  { %v1152_v53 = vmul.f32 %v1574_v40, %v1893_v48  ;;  %v1577_v48 = vld [vmem:[%s2020_s0] sm:$0xff] }
 0x698   :  { %1156 = vperm.xlu1 %1442, %v1152_v53  }
 0x699   :  { %v1576_v13 = vpop.eup %1575 }
 0x69a   :  { %v1153_v38 = vmul.f32 %v1576_v13, %v1899_v50 }
 0x69c   :  { %1161 = vperm.xlu1 %1442, %v1153_v38  }
 0x6a0   :  { %1443 = vset.pattern.permute.xlu1 %v1584_v16 }
 0x6a1   :  { %1173 = vperm.xlu1 %1443, %v1899_v50  }
 0x713   :  { %v1157_v12 = vpop.permute.xlu1 %1156 }
 0x714   :  { %v1164_v24 = vmul.f32 %v1157_v12, %v1132_v4  ;;  %v1165_v7 = vmul.f32 %v1157_v12, %v1133_v44 }
 0x716   :  { %v1176_v9 = vadd.f32 %v1170_v36, %v1164_v24  ;;  %v1177_v26 = vadd.f32 %v1170_v36, %v1165_v7 }
 0x717   :  { %v1162_v35 = vpop.permute.xlu1 %1161 }
 0x718   :  { %v1180_v58 = vmax.f32 %v1176_v9, 0.0  ;;  %v1181_v23 = vmax.f32 %v1177_v26, 0.0  ;;  %v1166_v50 = vmul.f32 %v1162_v35, %v1134_v29  ;;  %v1167_v8 = vmul.f32 %v1162_v35, %v1135_v54 }
 0x71a   :  { %v1184_v39 = vadd.f32 %v1577_v48, %v1180_v58  ;;  %v1185_v25 = vadd.f32 %v1578_v30, %v1181_v23 }
 0x71c   :  { %1188 = vst [vmem:[%s2024_s4] sm:$0xff] %v1184_v39  ;;  %1189 = vst [vmem:[%s2024_s4 + $0x8] sm:$0xff] %v1185_v25  ;;  %v1174_v20 = vpop.permute.xlu1 %1173 }
 0x71d   :  { %v1178_v31 = vadd.f32 %v1174_v20, %v1166_v50  ;;  %v1179_v63 = vadd.f32 %v1174_v20, %v1167_v8 }
 0x71f   :  { %v1182_v32 = vmax.f32 %v1178_v31, 0.0  ;;  %v1183_v57 = vmax.f32 %v1179_v63, 0.0 }
 0x721   :  { %v1186_v59 = vadd.f32 %v1579_v1, %v1182_v32  ;;  %v1187_v55 = vadd.f32 %v1580_v21, %v1183_v57 }
 0x723   :  { %1190 = vst [vmem:[%s2024_s4 + $0x10] sm:$0xff] %v1186_v59  ;;  %1191 = vst [vmem:[%s2024_s4 + $0x18] sm:$0xff] %v1187_v55 }

</bundles_post_ra>
